<compile_context>
chip_gen: v7x
topology: tpu7x:2x2x1
jax: 0.10.0
libtpu: 0.0.40
codegen_flags: <defaults>
</compile_context>

<pallas_src>
import math
import functools

import jax
import jax.numpy as jnp
from jax import lax
from jax.experimental import pallas as pl
from jax.experimental.pallas import tpu as pltpu


TILE_M_DEFAULT = 512      # rows of (B*S) per grid step
TILE_V_DEFAULT = 2048     # vocab columns per grid step


def _round_up(x, m):
    return (x + m - 1) // m * m


# ------------------------------------------------------------------
# BertLMPredictionHead kernel.
#   grid = (num_row_tiles, num_vocab_tiles); vocab innermost ("arbitrary").
#   NOTE: ln_ref caching requires the j == 0 step to run before all other
#   vocab steps of the same row tile -> vocab axis MUST stay innermost and
#   sequential.  Do not mark it "parallel" or reorder the grid.
# ------------------------------------------------------------------
def lm_head_kernel(x_ref, wd_ref, bd_ref, gamma_ref, beta_ref,
                   emb_ref, dbias_ref, out_ref, ln_ref):
    # ---- transform (dense -> GELU -> LayerNorm): only at the first vocab step
    @pl.when(pl.program_id(1) == 0)
    def _():
        x = x_ref[...]                                        # [TM, H] bf16
        # x @ Wd^T : contract dim 1 of both operands (no in-kernel .T).
        h = lax.dot_general(
            x, wd_ref[...],
            dimension_numbers=(((1,), (1,)), ((), ())),
            preferred_element_type=jnp.float32)               # [TM, H] f32
        h = h + bd_ref[...]                                   # [1, H] f32
        # exact (erf) GELU, matching the PyTorch reference
        g = h * 0.5 * (1.0 + lax.erf(h * (1.0 / math.sqrt(2.0))))
        # BertLayerNorm: biased variance, eps=1e-12 inside the sqrt
        mean = jnp.mean(g, axis=-1, keepdims=True)
        var = jnp.mean((g - mean) ** 2, axis=-1, keepdims=True)
        ln = (g - mean) * lax.rsqrt(var + 1e-12)
        ln = ln * gamma_ref[...] + beta_ref[...]
        ln_ref[...] = ln.astype(ln_ref.dtype)                 # cache as bf16

    # ---- decoder over the current vocab tile: ln @ E_tile^T + bias ----
    logits = lax.dot_general(
        ln_ref[...], emb_ref[...],
        dimension_numbers=(((1,), (1,)), ((), ())),
        preferred_element_type=jnp.float32)                   # [TM, TV] f32
    out_ref[...] = (logits + dbias_ref[...]).astype(out_ref.dtype)


def _const_spec(shape):
    """BlockSpec for operands whose block index never changes over the grid.

    Single-buffer them (pl.Buffered(1)) to free VMEM for larger row/vocab
    tiles; fall back gracefully if this jax version lacks pipeline_mode."""
    try:
        return pl.BlockSpec(shape, lambda i, j: (0, 0),
                            pipeline_mode=pl.Buffered(1))
    except TypeError:
        return pl.BlockSpec(shape, lambda i, j: (0, 0))


def prepare_params(params):
    """One-time parameter prep (call OUTSIDE the per-step forward).

    Casts the big matmul operands (tied embedding, dense_w) to bf16 and
    reshapes the small vectors, so the jitted forward does not re-cast a full
    V x H tensor (an extra ~180 MB of HBM traffic for BERT-base) every call."""
    p = dict(params)
    p["dense_w"] = params["dense_w"].astype(jnp.bfloat16)        # [H, H]
    p["emb"] = params["emb"].astype(jnp.bfloat16)                # [V, H]
    p["dense_b"] = params["dense_b"].reshape(1, -1).astype(jnp.float32)
    p["ln_gamma"] = params["ln_gamma"].reshape(1, -1).astype(jnp.float32)
    p["ln_beta"] = params["ln_beta"].reshape(1, -1).astype(jnp.float32)
    p["dec_bias"] = params["dec_bias"].reshape(1, -1).astype(jnp.float32)
    return p


@functools.partial(jax.jit,
                   static_argnames=("tile_m", "tile_v", "logits_dtype"))
def bert_pretraining_heads(sequence_output, pooled_output, params,
                           tile_m=None, tile_v=None,
                           logits_dtype=jnp.float32):
    """Forward pass of BertPreTrainingHeads.

    sequence_output: [B, S, H] float32
    pooled_output:   [B, H]    float32
    returns (prediction_scores [B, S, V] logits_dtype,
             seq_relationship_score [B, 2] f32)
    """
    B, S, H = sequence_output.shape
    V = params["emb"].shape[0]
    M = B * S

    # Tile sizes: row tiles multiples of 16 (bf16 sublane packing),
    # vocab tiles multiples of 128 (lane-dense output stores).
    if tile_m is None:
        tile_m = TILE_M_DEFAULT
        # v7x megacore: keep >= 2 row tiles when possible so the "parallel"
        # row axis gives both TensorCores work.
        tile_m = min(tile_m, max(16, _round_up(pl.cdiv(M, 2), 16)))
    if tile_v is None:
        tile_v = min(TILE_V_DEFAULT, _round_up(V, 128))
    assert tile_m % 16 == 0 and tile_v % 128 == 0

    # Activations / big weights in bf16 for the MXU and to halve HBM traffic;
    # accumulation stays f32 inside the kernel.  astype is a no-op when params
    # were pre-prepared with prepare_params().
    x2d = sequence_output.reshape(M, H).astype(jnp.bfloat16)
    dense_w = params["dense_w"].astype(jnp.bfloat16)             # [H, H]
    dense_b = params["dense_b"].reshape(1, H).astype(jnp.float32)
    gamma = params["ln_gamma"].reshape(1, H).astype(jnp.float32)
    beta = params["ln_beta"].reshape(1, H).astype(jnp.float32)
    emb = params["emb"].astype(jnp.bfloat16)                     # [V, H] tied weights
    dbias = params["dec_bias"].reshape(1, V).astype(jnp.float32)

    # Exact output shape: Pallas mask-stores the ragged last row/vocab tiles,
    # so there is no pad-then-slice copy of the full logits tensor.
    grid = (pl.cdiv(M, tile_m), pl.cdiv(V, tile_v))

    pred2d = pl.pallas_call(
        lm_head_kernel,
        out_shape=jax.ShapeDtypeStruct((M, V), logits_dtype),
        grid_spec=pltpu.PrefetchScalarGridSpec(
            num_scalar_prefetch=0,
            grid=grid,
            in_specs=[
                pl.BlockSpec((tile_m, H), lambda i, j: (i, 0)),   # x rows (resident over j)
                _const_spec((H, H)),                              # dense W (resident, 1-buf)
                _const_spec((1, H)),                              # dense b
                _const_spec((1, H)),                              # LN gamma
                _const_spec((1, H)),                              # LN beta
                pl.BlockSpec((tile_v, H), lambda i, j: (j, 0)),   # embedding tile
                pl.BlockSpec((1, tile_v), lambda i, j: (0, j)),   # decoder bias tile
            ],
            out_specs=pl.BlockSpec((tile_m, tile_v), lambda i, j: (i, j)),
            scratch_shapes=[pltpu.VMEM((tile_m, H), jnp.bfloat16)],  # cached LN acts
        ),
        compiler_params=pltpu.CompilerParams(
            dimension_semantics=("parallel", "arbitrary")),
    )(x2d, dense_w, dense_b, gamma, beta, emb, dbias)

    prediction_scores = pred2d.reshape(B, S, V)

    # seq_relationship head: [B, H] @ [H, 2] + [2].  Left to XLA per the perf
    # review (a Pallas call here is dominated by launch overhead and masked
    # 2-lane partial stores).
    seq_relationship_score = (
        jnp.dot(pooled_output, params["seqrel_w"].T,
                preferred_element_type=jnp.float32)
        + params["seqrel_b"])

    return prediction_scores, seq_relationship_score


# ------------------------------------------------------------------
# Pure-JAX f32 reference (mirrors the PyTorch module) for validation.
# ------------------------------------------------------------------
def reference_heads(sequence_output, pooled_output, params):
    h = sequence_output @ params["dense_w"].T + params["dense_b"]
    g = h * 0.5 * (1.0 + lax.erf(h / math.sqrt(2.0)))
    mean = jnp.mean(g, axis=-1, keepdims=True)
    var = jnp.mean((g - mean) ** 2, axis=-1, keepdims=True)
    ln = (g - mean) / jnp.sqrt(var + 1e-12)
    ln = ln * params["ln_gamma"] + params["ln_beta"]
    pred = ln @ params["emb"].T + params["dec_bias"]
    rel = pooled_output @ params["seqrel_w"].T + params["seqrel_b"]
    return pred, rel


def init_params(key, hidden_size, vocab_size):
    ks = jax.random.split(key, 3)
    scale = 0.02
    return {
        "dense_w": scale * jax.random.normal(ks[0], (hidden_size, hidden_size), jnp.float32),
        "dense_b": jnp.zeros((hidden_size,), jnp.float32),
        "ln_gamma": jnp.ones((hidden_size,), jnp.float32),
        "ln_beta": jnp.zeros((hidden_size,), jnp.float32),
        # tied embedding weights: [vocab_size, hidden_size]
        "emb": scale * jax.random.normal(ks[1], (vocab_size, hidden_size), jnp.float32),
        "dec_bias": jnp.zeros((vocab_size,), jnp.float32),
        "seqrel_w": scale * jax.random.normal(ks[2], (2, hidden_size), jnp.float32),
        "seqrel_b": jnp.zeros((2,), jnp.float32),
    }


if __name__ == "__main__":
    # Small shapes; B*S and V are deliberately NOT multiples of the tiles so
    # the ragged (masked-store) boundary path is exercised, and small explicit
    # tiles force a multi-step grid (pl.when / scratch-reuse / residency).
    B, S, H, V = 2, 9, 128, 320

    key = jax.random.PRNGKey(0)
    k_seq, k_pool, k_params = jax.random.split(key, 3)

    sequence_output = jax.random.normal(k_seq, (B, S, H), jnp.float32)
    pooled_output = jax.random.normal(k_pool, (B, H), jnp.float32)
    raw_params = init_params(k_params, H, V)
    params = prepare_params(raw_params)   # one-time bf16 cast of emb / dense_w

    # (a) f32 logits, small explicit tiles -> ragged last row AND vocab tiles.
    pred, seq_rel = bert_pretraining_heads(sequence_output, pooled_output,
                                           params, tile_m=16, tile_v=128)
    jax.block_until_ready((pred, seq_rel))
    assert pred.shape == (B, S, V) and pred.dtype == jnp.float32
    assert seq_rel.shape == (B, 2)

    # Validate against the f32 reference (bf16 matmul operands -> loose tol).
    ref_pred, ref_rel = reference_heads(sequence_output, pooled_output, raw_params)
    max_err = float(jnp.max(jnp.abs(pred - ref_pred)))
    assert jnp.allclose(pred, ref_pred, atol=5e-2, rtol=5e-2), max_err
    assert jnp.allclose(seq_rel, ref_rel, atol=1e-4, rtol=1e-4)

    # (b) bf16 logits output path with default tile selection (halved writeback).
    pred_bf16, _ = bert_pretraining_heads(sequence_output, pooled_output, params,
                                          logits_dtype=jnp.bfloat16)
    jax.block_until_ready(pred_bf16)
    assert pred_bf16.shape == (B, S, V) and pred_bf16.dtype == jnp.bfloat16
    bf16_err = float(jnp.max(jnp.abs(pred_bf16.astype(jnp.float32) - ref_pred)))
    assert jnp.allclose(pred_bf16.astype(jnp.float32), ref_pred,
                        atol=1e-1, rtol=1e-1), bf16_err

    print("KERNEL_OK")
</pallas_src>

<mosaic_0001>
module attributes {stable_mosaic.version = 11 : i64} {
  func.func @lm_head_kernel(%arg0: i32, %arg1: i32, %arg2: memref<16x128xbf16, #tpu.memory_space<vmem>>, %arg3: memref<128x128xbf16, #tpu.memory_space<vmem>>, %arg4: memref<1x128xf32, #tpu.memory_space<vmem>>, %arg5: memref<1x128xf32, #tpu.memory_space<vmem>>, %arg6: memref<1x128xf32, #tpu.memory_space<vmem>>, %arg7: memref<128x128xbf16, #tpu.memory_space<vmem>>, %arg8: memref<1x128xf32, #tpu.memory_space<vmem>>, %arg9: memref<16x128xf32, #tpu.memory_space<vmem>>, %arg10: memref<16x128xbf16, #tpu.memory_space<vmem>>) attributes {dimension_semantics = [#tpu.dimension_semantics<parallel>, #tpu.dimension_semantics<arbitrary>], iteration_bounds = array<i64: 2, 3>, scalar_prefetch = 0 : i64, scratch_operands = 1 : i64, tpu.core_type = #tpu.core_type<tc>, window_params = [{transform_indices = @transform_0, window_bounds = array<i64: 16, 128>}, {pipeline_mode = #tpu.pipeline_mode<synchronous>, transform_indices = @transform_1, window_bounds = array<i64: 128, 128>}, {pipeline_mode = #tpu.pipeline_mode<synchronous>, transform_indices = @transform_2, window_bounds = array<i64: 1, 128>}, {pipeline_mode = #tpu.pipeline_mode<synchronous>, transform_indices = @transform_3, window_bounds = array<i64: 1, 128>}, {pipeline_mode = #tpu.pipeline_mode<synchronous>, transform_indices = @transform_4, window_bounds = array<i64: 1, 128>}, {transform_indices = @transform_5, window_bounds = array<i64: 128, 128>}, {transform_indices = @transform_6, window_bounds = array<i64: 1, 128>}, {transform_indices = @transform_7, window_bounds = array<i64: 16, 128>}]} {
    %c0_i32 = arith.constant 0 : i32
    %0 = arith.cmpi eq, %arg1, %c0_i32 : i32
    %1 = arith.extui %0 : i1 to i32
    %c0_i32_0 = arith.constant 0 : i32
    %2 = arith.cmpi ne, %1, %c0_i32_0 : i32
    scf.if %2 {
      %c0_8 = arith.constant 0 : index
      %c0_9 = arith.constant 0 : index
      %10 = vector.load %arg2[%c0_8, %c0_9] : memref<16x128xbf16, #tpu.memory_space<vmem>>, vector<16x128xbf16>
      %c0_10 = arith.constant 0 : index
      %c0_11 = arith.constant 0 : index
      %11 = vector.load %arg3[%c0_10, %c0_11] : memref<128x128xbf16, #tpu.memory_space<vmem>>, vector<128x128xbf16>
      %cst_12 = arith.constant dense<0.000000e+00> : vector<16x128xf32>
      %12 = tpu.matmul %10, %11, %cst_12 {dimension_numbers = #tpu.dot_dimension_numbers<[1], [1], [0], [0], [0, 0, 1, 0], [], []>} : vector<16x128xbf16>, vector<128x128xbf16>, vector<16x128xf32> -> vector<16x128xf32>
      %c0_13 = arith.constant 0 : index
      %c0_14 = arith.constant 0 : index
      %13 = vector.load %arg4[%c0_13, %c0_14] : memref<1x128xf32, #tpu.memory_space<vmem>>, vector<1x128xf32>
      %14 = vector.broadcast %13 : vector<1x128xf32> to vector<16x128xf32>
      %15 = arith.addf %12, %14 : vector<16x128xf32>
      %cst_15 = arith.constant 5.000000e-01 : f32
      %16 = vector.broadcast %cst_15 : f32 to vector<16x128xf32>
      %17 = arith.mulf %15, %16 : vector<16x128xf32>
      %cst_16 = arith.constant 0.707106769 : f32
      %18 = vector.broadcast %cst_16 : f32 to vector<16x128xf32>
      %19 = arith.mulf %15, %18 : vector<16x128xf32>
      %20 = math.erf %19 : vector<16x128xf32>
      %cst_17 = arith.constant 1.000000e+00 : f32
      %21 = vector.broadcast %cst_17 : f32 to vector<16x128xf32>
      %22 = arith.addf %21, %20 : vector<16x128xf32>
      %23 = arith.mulf %17, %22 : vector<16x128xf32>
      %cst_18 = arith.constant dense<0.000000e+00> : vector<16xf32>
      %24 = vector.multi_reduction <add>, %23, %cst_18 [1] : vector<16x128xf32> to vector<16xf32>
      %25 = vector.shape_cast %24 : vector<16xf32> to vector<16x1xf32>
      %cst_19 = arith.constant 1.280000e+02 : f32
      %26 = vector.broadcast %cst_19 : f32 to vector<16x1xf32>
      %27 = arith.divf %25, %26 : vector<16x1xf32>
      %28 = vector.broadcast %27 : vector<16x1xf32> to vector<16x128xf32>
      %29 = arith.subf %23, %28 : vector<16x128xf32>
      %30 = arith.mulf %29, %29 : vector<16x128xf32>
      %cst_20 = arith.constant dense<0.000000e+00> : vector<16xf32>
      %31 = vector.multi_reduction <add>, %30, %cst_20 [1] : vector<16x128xf32> to vector<16xf32>
      %32 = vector.shape_cast %31 : vector<16xf32> to vector<16x1xf32>
      %cst_21 = arith.constant 1.280000e+02 : f32
      %33 = vector.broadcast %cst_21 : f32 to vector<16x1xf32>
      %34 = arith.divf %32, %33 : vector<16x1xf32>
      %35 = vector.broadcast %27 : vector<16x1xf32> to vector<16x128xf32>
      %36 = arith.subf %23, %35 : vector<16x128xf32>
      %cst_22 = arith.constant 9.99999996E-13 : f32
      %37 = vector.broadcast %cst_22 : f32 to vector<16x1xf32>
      %38 = arith.addf %34, %37 : vector<16x1xf32>
      %39 = math.rsqrt %38 : vector<16x1xf32>
      %40 = vector.broadcast %39 : vector<16x1xf32> to vector<16x128xf32>
      %41 = arith.mulf %36, %40 : vector<16x128xf32>
      %c0_23 = arith.constant 0 : index
      %c0_24 = arith.constant 0 : index
      %42 = vector.load %arg5[%c0_23, %c0_24] : memref<1x128xf32, #tpu.memory_space<vmem>>, vector<1x128xf32>
      %43 = vector.broadcast %42 : vector<1x128xf32> to vector<16x128xf32>
      %44 = arith.mulf %41, %43 : vector<16x128xf32>
      %c0_25 = arith.constant 0 : index
      %c0_26 = arith.constant 0 : index
      %45 = vector.load %arg6[%c0_25, %c0_26] : memref<1x128xf32, #tpu.memory_space<vmem>>, vector<1x128xf32>
      %46 = vector.broadcast %45 : vector<1x128xf32> to vector<16x128xf32>
      %47 = arith.addf %44, %46 : vector<16x128xf32>
      %48 = arith.truncf %47 : vector<16x128xf32> to vector<16x128xbf16>
      %c0_27 = arith.constant 0 : index
      %c0_28 = arith.constant 0 : index
      %49 = vector.load %arg10[%c0_27, %c0_28] : memref<16x128xbf16, #tpu.memory_space<vmem>>, vector<16x128xbf16>
      tpu.vector_store %arg10[%c0_27, %c0_28], %48 {strides = array<i32>} : memref<16x128xbf16, #tpu.memory_space<vmem>>, vector<16x128xbf16>,
    } else {
    }
    %c0 = arith.constant 0 : index
    %c0_1 = arith.constant 0 : index
    %3 = vector.load %arg10[%c0, %c0_1] : memref<16x128xbf16, #tpu.memory_space<vmem>>, vector<16x128xbf16>
    %c0_2 = arith.constant 0 : index
    %c0_3 = arith.constant 0 : index
    %4 = vector.load %arg7[%c0_2, %c0_3] : memref<128x128xbf16, #tpu.memory_space<vmem>>, vector<128x128xbf16>
    %cst = arith.constant dense<0.000000e+00> : vector<16x128xf32>
    %5 = tpu.matmul %3, %4, %cst {dimension_numbers = #tpu.dot_dimension_numbers<[1], [1], [0], [0], [0, 0, 1, 0], [], []>} : vector<16x128xbf16>, vector<128x128xbf16>, vector<16x128xf32> -> vector<16x128xf32>
    %c0_4 = arith.constant 0 : index
    %c0_5 = arith.constant 0 : index
    %6 = vector.load %arg8[%c0_4, %c0_5] : memref<1x128xf32, #tpu.memory_space<vmem>>, vector<1x128xf32>
    %7 = vector.broadcast %6 : vector<1x128xf32> to vector<16x128xf32>
    %8 = arith.addf %5, %7 : vector<16x128xf32>
    %c0_6 = arith.constant 0 : index
    %c0_7 = arith.constant 0 : index
    %9 = vector.load %arg9[%c0_6, %c0_7] : memref<16x128xf32, #tpu.memory_space<vmem>>, vector<16x128xf32>
    tpu.vector_store %arg9[%c0_6, %c0_7], %8 {strides = array<i32>} : memref<16x128xf32, #tpu.memory_space<vmem>>, vector<16x128xf32>,
    return
  }
  func.func @transform_0(%arg0: i32, %arg1: i32) -> (i32, i32) {
    %c0_i32 = arith.constant 0 : i32
    %c0_i32_0 = arith.constant 0 : i32
    return %arg0, %c0_i32 : i32, i32
  }
  func.func @transform_1(%arg0: i32, %arg1: i32) -> (i32, i32) {
    %c0_i32 = arith.constant 0 : i32
    %c0_i32_0 = arith.constant 0 : i32
    %c0_i32_1 = arith.constant 0 : i32
    return %c0_i32, %c0_i32_0 : i32, i32
  }
  func.func @transform_2(%arg0: i32, %arg1: i32) -> (i32, i32) {
    %c0_i32 = arith.constant 0 : i32
    %c0_i32_0 = arith.constant 0 : i32
    %c0_i32_1 = arith.constant 0 : i32
    return %c0_i32, %c0_i32_0 : i32, i32
  }
  func.func @transform_3(%arg0: i32, %arg1: i32) -> (i32, i32) {
    %c0_i32 = arith.constant 0 : i32
    %c0_i32_0 = arith.constant 0 : i32
    %c0_i32_1 = arith.constant 0 : i32
    return %c0_i32, %c0_i32_0 : i32, i32
  }
  func.func @transform_4(%arg0: i32, %arg1: i32) -> (i32, i32) {
    %c0_i32 = arith.constant 0 : i32
    %c0_i32_0 = arith.constant 0 : i32
    %c0_i32_1 = arith.constant 0 : i32
    return %c0_i32, %c0_i32_0 : i32, i32
  }
  func.func @transform_5(%arg0: i32, %arg1: i32) -> (i32, i32) {
    %c0_i32 = arith.constant 0 : i32
    %c0_i32_0 = arith.constant 0 : i32
    return %arg1, %c0_i32 : i32, i32
  }
  func.func @transform_6(%arg0: i32, %arg1: i32) -> (i32, i32) {
    %c0_i32 = arith.constant 0 : i32
    %c0_i32_0 = arith.constant 0 : i32
    return %c0_i32, %arg1 : i32, i32
  }
  func.func @transform_7(%arg0: i32, %arg1: i32) -> (i32, i32) {
    %c0_i32 = arith.constant 0 : i32
    return %arg0, %arg1 : i32, i32
  }
}

</mosaic_0001>

<bundles_post_ra>
// kernel: bert_pretraining_heads.1
= control target key start
LH: loop header
LB: loop body
LE: loop exit
PB: predicated region body
PF: predicated region fallthrough
CT: control target
= control target key end

     0   :  { %12 = vsyncpa [#allocation4], 0  ;;  %s1730_s0 = inlined_call_operand.vmem [shape: bf16[18,128], index: 0, kind: input, shape index: {}]   ;;  %s1731_s1 = inlined_call_operand.vmem [shape: bf16[128,128], index: 1, kind: input, shape index: {}]   ;;  %s1732_s2 = inlined_call_operand.vmem [shape: f32[1,128], index: 2, kind: input, shape index: {}]   ;;  %s1733_s3 = inlined_call_operand.vmem [shape: f32[1,128], index: 3, kind: input, shape index: {}]   ;;  %s1734_s4 = inlined_call_operand.vmem [shape: f32[1,128], index: 4, kind: input, shape index: {}]   ;;  %s1735_s5 = inlined_call_operand.hbm [shape: bf16[320,128], index: 5, kind: input, shape index: {}]   ;;  %s1736_s6 = inlined_call_operand.vmem [shape: f32[1,320], index: 6, kind: input, shape index: {}]   ;;  %s1737_s7 = inlined_call_operand.vmem [shape: f32[18,320], index: 7, kind: output, shape index: {}]  }
   0x1   :  { %14 = vsyncpa [#allocation4 + $0x1], 0  ;;  %s1452_s24 = smov 0   ;;  %s1454_s25 = smov 0  }
   0x2   :  { %s1456_s26 = smov 0   ;;  %s1458_s27 = smov 0  }
   0x3   :  { %s1460_s28 = smov 0   ;;  %s1462_s29 = smov 0  }
   0x4   :  { %s1464_s30 = smov 0   ;;  %s1466_s8 = smov 0  }
   0x5   :  { %s1468_s9 = smov 0   ;;  %s1470_s10 = smov 0  }
   0x6 LB: > { %1742 = sst [smem:[#allocation7_spill]] %s1363_s8  ;;  %s938_s11 = sadd.s32 4294967295, %s1371_s10   ;;  %s1371_s10 = sphi %s1470_s10, %s20_s10   ;;  %s1367_s9 = sphi %s1468_s9, %s1754_s9   ;;  %s1363_s8 = sphi %s1466_s8, %s1753_s8   ;;  %s1359_s30 = sphi %s1464_s30, %s1752_s30   ;;  %s1355_s29 = sphi %s1462_s29, %s1751_s29   ;;  %s1351_s28 = sphi %s1460_s28, %s1759_s28   ;;  %s1347_s27 = sphi %s1458_s27, %s1758_s27   ;;  %s1343_s26 = sphi %s1456_s26, %s1757_s26   ;;  %s1339_s25 = sphi %s1454_s25, %s1756_s25   ;;  %s1335_s24 = sphi %s1452_s24, %s1755_s24  }
   0x7   : > { %1743 = sst [smem:[#allocation8_spill]] %s1367_s9  ;;  %s29_s12 = sadd.s32 1, %s1363_s8 }
   0x8   : > { %p30_p0 = scmp.ge.s32.totalorder %s29_s12, 3  ;;  %s32_s13 = sadd.s32 1, %s1367_s9 }
   0x9   : > { %s149_s14 = sadd.s32 1, %s1351_s28  ;;  %p156_p1 = scmp.ne.s32.totalorder %s1351_s28, %s1347_s27 }
   0xa   : > { %s1761_s12 = smov (%p30_p0, %s29_s12), 0  ;;  %s1763_s13 = smov (!%p30_p0, %s32_s13), %s1367_s9 }
   0xb   : > { %1744 = sst [smem:[#allocation9_spill]] %s1761_s12  ;;  %s146_s15 = ssub.s32 %s1363_s8, %s1761_s12 }
   0xc   : > { %p157_p2 = scmp.eq.s32.totalorder %s1371_s10, 0  ;;  %p34_p3 = scmp.ge.s32.totalorder %s1763_s13, 2 }
   0xd   : > { %p147_p4 = scmp.eq.s32.totalorder %s146_s15, 0  ;;  %p162_p6 = scmp.ne.s32.totalorder %s1347_s27, %s1343_s26 }
   0xe   : > { %p1512_p5 = por %p157_p2, %p156_p1  ;;  %s1765_s13 = smov (%p34_p3, %s1763_s13), 0 }
   0xf   : > { %1746 = sst [smem:[#allocation10_spill]] %s1765_s13  ;;  %p163_p7 = scmp.eq.s32.totalorder %s938_s11, 0 }
  0x10   : > { %s1520_s17 = scalar_select %p147_p4, %s1351_s28, %s149_s14  }
  0x11   : > { %s198_s18 = ssub.s32 %s1367_s9, %s1765_s13  ;;  %s203_s20 = sadd.s32 1, %s1339_s25 }
  0x12   : > { %1747 = sst [smem:[#allocation11_spill]] %s1520_s17  ;;  %s200_s19 = sor.u32 %s198_s18, %s146_s15 }
  0x13   : > { %p1525_p8 = por %p163_p7, %p162_p6  ;;  %p201_p9 = scmp.eq.s32.totalorder %s200_s19, 0 }
  0x14   : > { %p213_p10 = scmp.ne.s32.totalorder %s1339_s25, %s1335_s24  ;;  %p214_p11 = scmp.eq.s32.totalorder %s938_s11, 5 }
  0x15   : > { %s1532_s22 = scalar_select %p201_p9, %s1339_s25, %s203_s20  }
  0x16   : > { %p1534_p12 = por %p214_p11, %p213_p10  ;;  %p941_p13 = scmp.ge.s32.totalorder %s1371_s10, 6 }
  0x18   : > { %248 = sbr.rel (%p941_p13) target bundleno = 66 (0x42), region = 32 }
  0x1f   : > { %268 = sbr.rel (!%p1512_p5) target bundleno = 66 (0x42), region = 40  ;;  %s269_s26 = sand.u32 (%p1512_p5), 1, %s1351_s28  }
  0x20   : > { %s943_s14 = sshll.u32 (%p1512_p5), %s1363_s8, 4  ;;  %s942_s15 = sshll.u32 (%p1512_p5), %s269_s26, 6 }
  0x21   : > { %s275_s18 = ssub.s32 (%p1512_p5), 40, %s943_s14  ;;  %s1546_s20 = scalar_lea.sflag (%p1512_p5), [#allocation4], %s269_s26 }
  0x22   : > { %p276_p0 = scmp.lt.s32.totalorder (%p1512_p5), %s275_s18, 16  ;;  %s273_s13 = scalar_lea.vmem (%p1512_p5), [#allocation3], %s942_s15 }
  0x26   : > { %s1767_s18 = smov (!%p276_p0, %s275_s18), 16 }
  0x27   : > { %s1543_s11 = sshll.u32 %s1767_s18, 6 }
  0x28   : > { %s280_s19 = ssub.s32 1024, %s1543_s11 }
  0x29   : > { %281 = vsyncadd %s1546_s20, %s280_s19  ;;  %p945_p1 = scmp.ne.s32.totalorder %s1543_s11, 0  ;;  %s992_s16 = sshll.u32 %s1363_s8, 10 }
  0x2a   : > { %s1554_s14 = scalar_lea.hbm %s1735_s5, %s992_s16  ;;  %s286_s26 = sshll.u32 %s273_s13, 4  ;;  %s1556_s26 = int_to_ptr.vmem [resolvable:$true] %s286_s26 }
  0x2b   : > { %s1229_s15 = scalar_lea.hbm %s1554_s14, %s1543_s11  ;;  %s1233_s8 = scalar_lea.hbm %s1735_s5, 2560 }
  0x2c   : > { %p1230_p2 = scmp.ne.s32.totalorder %s1554_s14, %s1229_s15  ;;  %p1234_p5 = scmp.lt.u32.totalorder %s1554_s14, %s1735_s5 }
  0x2d   : > { %p1235_p6 = scmp.lt.u32.totalorder %s1233_s8, %s1229_s15  ;;  %p1237_p9 = scmp.lt.u32.totalorder %s1229_s15, %s1554_s14 }
  0x2e   : > { %p1231_p3 = pnand %p1230_p2, %p945_p1 }
  0x2f   : > { %p1236_p7 = por %p1235_p6, %p1234_p5 }
  0x30   : > { %p1232_p4 = pneg %p1231_p3 }
  0x31   : > { %p1238_p10 = por %p1237_p9, %p1236_p7 }
  0x33   : > { %p1239_p11 = pnand %p1238_p10, %p1232_p4 }
  0x35   : > { %1242 = shalt.err (!%p1239_p11)
}
  0x36   : > { %s1243_s12 = scalar_lea.vmem %s1556_s26, %s1543_s11  ;;  %s1405_s13 = smov [#allocation3]  }
  0x37   : > { %p1244_p13 = scmp.ne.s32.totalorder %s1556_s26, %s1243_s12  ;;  %s1247_s16 = sshll.u32 %s1405_s13, 4  ;;  %s1248_s16 = int_to_ptr.vmem [resolvable:$false] %s1247_s16 }
  0x38   : > { %s1249_s17 = scalar_lea.vmem %s1248_s16, 2048  ;;  %p1250_p3 = scmp.lt.s32.totalorder %s1556_s26, %s1248_s16 }
  0x39   : > { %p1245_p0 = pnand %p1244_p13, %p945_p1  ;;  %p1251_p5 = scmp.lt.s32.totalorder %s1249_s17, %s1243_s12 }
  0x3b   : > { %p1246_p2 = pneg %p1245_p0  ;;  %p1252_p6 = por %p1251_p5, %p1250_p3 }
  0x3d   : > { %p1253_p7 = pnand %p1252_p6, %p1246_p2 }
  0x3f   : > { %1256 = shalt.err (!%p1253_p7)
}
  0x40   : > { %s1406_s8 = smov 64   ;;  %s1407_s15 = smov 4  }
  0x41   : > { %292 = dma.hbm_to_vmem [thread:$0]  (%p945_p1), %s1554_s14, %s1543_s11, %s1556_s26, %s1546_s20, %s1406_s8, %s1406_s8, %s1407_s15  }
  0x42 PF: > { %p949_p4 = scmp.ge.s32.totalorder %s1371_s10, 1  ;;  %p300_p9 = scmp.lt.s32.totalorder %s1371_s10, 7 }
  0x44   : > { %p301_p10 = pnand %p949_p4, %p300_p9 }
  0x45   : > { %s306_s18 = sand.u32 (!%p301_p10), 1, %s1347_s27  }
  0x46   : > { %304 = sbr.rel (%p301_p10) target bundleno = 1029 (0x405), region = 48  ;;  %s950_s19 = sshll.u32 (!%p301_p10), %s306_s18, 6 }
  0x47   : > { %s307_s9 = scalar_lea.sflag (!%p301_p10), [#allocation4], %s306_s18  ;;  %s1586_s12 = scalar_lea.vmem (!%p301_p10), [#allocation3], %s950_s19 }
  0x4d   : > { %1330 = dma.done.wait (%p1525_p8), %s307_s9, 1024  }
  0x4e   : > { %1332 = vsyncadd (%p1525_p8), %s307_s9, 4294966272  ;;  %s349_s11 = sand.u32 1, %s1335_s24   ;;  %s1594_s20 = sshll.u32 %s1359_s30, 1 }
  0x4f   : > { %s951_s14 = sshll.u32 %s349_s11, 4  ;;  %p357_p1 = scmp.lt.s32.totalorder %s1594_s20, 2 }
  0x50   : > { %p371_p11 = scmp.lt.s32.totalorder %s1355_s29, 2  ;;  %s1611_s19 = scalar_lea.vmem [#allocation5], %s951_s14  }
  0x51   : > { %s358_s26 = scalar_select %p357_p1, %s1594_s20, 2 }
  0x52   : > { %s1600_s13 = scalar_select %p371_p11, %s1355_s29, 2 }
  0x53   : > { %s953_s16 = sshll.u32 %s358_s26, 2  ;;  %p954_p8 = scmp.ne.s32.totalorder %s1355_s29, 0 }
  0x54   : > { %s1605_s8 = scalar_lea.vmem %s1730_s0, %s953_s16  ;;  %s373_s24 = scalar_lea.vmem %s1736_s6, %s1600_s13  ;;  %v1204_v0 = vld [vmem:[%s1731_s1] sm:$0xff] (!%p954_p8)   ;;  %v1408_v1 = vmov (!%p954_p8), 0.0   ;;  %vm1409_vm0 = vmmov (!%p954_p8), 0   ;;  %v1205_v2 = vld [vmem:[%s1731_s1 + $0x8] sm:$0xff] (!%p954_p8)   ;;  %v1206_v3 = vld [vmem:[%s1731_s1 + $0x10] sm:$0xff] (!%p954_p8)  }
  0x55   : > { %383 = sbr.rel (%p954_p8) target bundleno = 698 (0x2ba), region = 56  ;;  %1012 = vmatprep.subr.bf16.mxu0 (!%p954_p8), %v1408_v1  ;;  %1028 = vmatprep.mubr.msk.bf16.mxu0 (!%p954_p8), %vm1409_vm0, %v1408_v1  ;;  %v1207_v4 = vld [vmem:[%s1731_s1 + $0x18] sm:$0xff] (!%p954_p8)   ;;  %v1208_v5 = vld [vmem:[%s1731_s1 + $0x20] sm:$0xff] (!%p954_p8)   ;;  %v1209_v6 = vld [vmem:[%s1731_s1 + $0x28] sm:$0xff] (!%p954_p8)  }
  0x56   : > { %1013 = vmatpush3.bf16.xpose.msra.mxu0 (!%p954_p8), %v1204_v0  ;;  %v1210_v7 = vld [vmem:[%s1731_s1 + $0x30] sm:$0xff] (!%p954_p8)   ;;  %v1211_v8 = vld [vmem:[%s1731_s1 + $0x38] sm:$0xff] (!%p954_p8)   ;;  %v1212_v9 = vld [vmem:[%s1605_s8] sm:$0xff] (!%p954_p8)  }
  0x57   : > { %1014 = vmatprep.subr.bf16.mxu0 (!%p954_p8), %v1408_v1  ;;  %v955_v10 = vld [vmem:[%s1732_s2] ss:$0 sm:$0xff] (!%p954_p8) }
  0x58   : > { %v965_v43 = vld [vmem:[%s1733_s3] ss:$0 sm:$0xff] (!%p954_p8) }
  0x59   : > { %v966_v47 = vld [vmem:[%s1734_s4] ss:$0 sm:$0xff] (!%p954_p8) }
  0x5e   : > { %1015 = vmatpush3.bf16.xpose.msra.mxu0 %v1205_v2 }
  0x5f   : > { %1016 = vmatprep.subr.bf16.mxu0 %v1408_v1 }
  0x66   : > { %1017 = vmatpush3.bf16.xpose.msra.mxu0 %v1206_v3 }
  0x67   : > { %1018 = vmatprep.subr.bf16.mxu0 %v1408_v1 }
  0x6e   : > { %1019 = vmatpush3.bf16.xpose.msra.mxu0 %v1207_v4 }
  0x6f   : > { %1020 = vmatprep.subr.bf16.mxu0 %v1408_v1 }
  0x76   : > { %1021 = vmatpush3.bf16.xpose.msra.mxu0 %v1208_v5 }
  0x77   : > { %1022 = vmatprep.subr.bf16.mxu0 %v1408_v1 }
  0x7e   : > { %1023 = vmatpush3.bf16.xpose.msra.mxu0 %v1209_v6 }
  0x7f   : > { %1024 = vmatprep.subr.bf16.mxu0 %v1408_v1 }
  0x86   : > { %1025 = vmatpush3.bf16.xpose.msra.mxu0 %v1210_v7 }
  0x87   : > { %1026 = vmatprep.subr.bf16.mxu0 %v1408_v1 }
  0x8e   : > { %1027 = vmatpush3.bf16.xpose.msra.mxu0 %v1211_v8 }
  0x95   : > { %1029 = vmatmul.mubr.bf16.vlgmr.msra.gmra.mrb[0].mxu0 %v1212_v9 }
 0x168   : > { %v497_v11 = vpop.f32.mrb[0].mxu0 }
 0x169   : > { %v498_v12 = vadd.f32 %v955_v10, %v497_v11  ;;  %v1030_v13 = vpop.f32.mrb[1].mxu0 }
 0x16a   : > { %v500_v14 = vpop.f32.mrb[2].mxu0 }
 0x16b   : > { %v506_v15 = vmul.f32 0.70710677, %v498_v12  ;;  %v501_v16 = vadd.f32 %v955_v10, %v500_v14  ;;  %v1031_v17 = vpop.f32.mrb[3].mxu0  ;;  %v504_v20 = vmul.f32 0.5, %v498_v12 }
 0x16d   : > { %1213 = verf.f32 %v506_v15  ;;  %v507_v18 = vmul.f32 0.70710677, %v501_v16  ;;  %v505_v25 = vmul.f32 0.5, %v501_v16 }
 0x16f   : > { %1215 = verf.f32 %v507_v18 }
 0x177   : > { %v1214_v19 = vpop.eup %1213 }
 0x178   : > { %v510_v21 = vadd.f32 1.0, %v1214_v19 }
 0x179   : > { %v1216_v22 = vpop.eup %1215 }
 0x17a   : > { %v512_v23 = vmul.f32 %v510_v21, %v504_v20  ;;  %v511_v24 = vadd.f32 1.0, %v1216_v22 }
 0x17c   : > { %514 = vadd.xlane.f32.xlu0 %v512_v23  ;;  %v513_v26 = vmul.f32 %v511_v24, %v505_v25 }
 0x180   : > { %516 = vadd.xlane.f32.xlu0 %v513_v26 }
 0x209   : > { %v515_v27 = vpop.xlane.xlu0 %514 }
 0x20a   : > { %v519_v28 = vmul.f32 0.0078125, %v515_v27 }
 0x20c   : > { %v521_v29 = vsub.f32 %v512_v23, %v519_v28 }
 0x20d   : > { %v517_v30 = vpop.xlane.xlu0 %516 }
 0x20e   : > { %v520_v31 = vmul.f32 0.0078125, %v517_v30  ;;  %v523_v32 = vmul.f32 %v521_v29, %v521_v29 }
 0x210   : > { %v522_v33 = vsub.f32 %v513_v26, %v520_v31  ;;  %525 = vadd.xlane.f32.xlu1 %v523_v32 }
 0x212   : > { %v524_v34 = vmul.f32 %v522_v33, %v522_v33 }
 0x214   : > { %527 = vadd.xlane.f32.xlu1 %v524_v34 }
 0x29d   : > { %v526_v35 = vpop.xlane.xlu1 %525 }
 0x29e   : > { %v529_v36 = vmul.f32 0.0078125, %v526_v35 }
 0x2a0   : > { %v531_v37 = vadd.f32 1e-12, %v529_v36 }
 0x2a1   : > { %v528_v38 = vpop.xlane.xlu1 %527 }
 0x2a2   : > { %1217 = vrsqrt.f32 %v531_v37  ;;  %v530_v39 = vmul.f32 0.0078125, %v528_v38 }
 0x2a4   : > { %v532_v40 = vadd.f32 1e-12, %v530_v39 }
 0x2a6   : > { %1219 = vrsqrt.f32 %v532_v40 }
 0x2ac   : > { %v1218_v41 = vpop.eup %1217 }
 0x2ad   : > { %v535_v42 = vmul.f32 %v1218_v41, %v521_v29 }
 0x2af   : > { %v544_v45 = vmul.f32 %v965_v43, %v535_v42 }
 0x2b0   : > { %v1220_v44 = vpop.eup %1219 }
 0x2b1   : > { %v536_v46 = vmul.f32 %v1220_v44, %v522_v33  ;;  %v553_v49 = vadd.f32 %v966_v47, %v544_v45 }
 0x2b3   : > { %v545_v48 = vmul.f32 %v965_v43, %v536_v46 }
 0x2b5   : > { %v554_v50 = vadd.f32 %v966_v47, %v545_v48 }
 0x2b7   : > { %v555_v51 = vpack.c.bf16 %v554_v50, %v553_v49 }
 0x2b9   : > { %556 = vst [vmem:[#allocation2] sm:$0xff] %v555_v51 }
 0x2ba PF: > { %v1221_v52 = vld [vmem:[%s1586_s12] sm:$0xff]   ;;  %v1410_v53 = vmov 0.0   ;;  %vm1411_vm1 = vmmov 0   ;;  %v1222_v54 = vld [vmem:[%s1586_s12 + $0x8] sm:$0xff]   ;;  %v1223_v55 = vld [vmem:[%s1586_s12 + $0x10] sm:$0xff]   ;;  %s1052_s17 = smul.u32 (%p1534_p12), 6, %s1359_s30 }
 0x2bb   : > { %1032 = vmatprep.subr.bf16.mxu0 %v1410_v53  ;;  %1048 = vmatprep.mubr.msk.bf16.mxu0 %vm1411_vm1, %v1410_v53  ;;  %v1224_v56 = vld [vmem:[%s1586_s12 + $0x18] sm:$0xff]   ;;  %v1225_v57 = vld [vmem:[%s1586_s12 + $0x20] sm:$0xff]   ;;  %v1226_v58 = vld [vmem:[%s1586_s12 + $0x28] sm:$0xff]  }
 0x2bc   : > { %1033 = vmatpush3.bf16.xpose.msra.mxu0 %v1221_v52  ;;  %v1227_v59 = vld [vmem:[%s1586_s12 + $0x30] sm:$0xff]   ;;  %v1228_v60 = vld [vmem:[%s1586_s12 + $0x38] sm:$0xff]   ;;  %s680_s12 = ssub.s32 (%p1534_p12), 3, %s1594_s20  ;;  %s686_s21 = sadd.s32 (%p1534_p12), %s1355_s29, %s1052_s17 }
 0x2bd   : > { %1034 = vmatprep.subr.bf16.mxu0 %v1410_v53  ;;  %v967_v62 = vld [vmem:[%s373_s24] ss:$0 sm:$0xff]  ;;  %p681_p13 = scmp.lt.s32.totalorder (%p1534_p12), %s680_s12, 2  ;;  %s981_s13 = sshll.u32 (%p1534_p12), %s686_s21, 3 }
 0x2be   : > { %s1674_s8 = scalar_lea.vmem (%p1534_p12), %s1737_s7, %s981_s13  }
 0x2c0   : > { %v557_v61 = vld [vmem:[#allocation2] sm:$0xff] }
 0x2c4   : > { %1035 = vmatpush3.bf16.xpose.msra.mxu0 %v1222_v54 }
 0x2c5   : > { %1036 = vmatprep.subr.bf16.mxu0 %v1410_v53 }
 0x2cc   : > { %1037 = vmatpush3.bf16.xpose.msra.mxu0 %v1223_v55 }
 0x2cd   : > { %1038 = vmatprep.subr.bf16.mxu0 %v1410_v53 }
 0x2d4   : > { %1039 = vmatpush3.bf16.xpose.msra.mxu0 %v1224_v56 }
 0x2d5   : > { %1040 = vmatprep.subr.bf16.mxu0 %v1410_v53 }
 0x2dc   : > { %1041 = vmatpush3.bf16.xpose.msra.mxu0 %v1225_v57 }
 0x2dd   : > { %1042 = vmatprep.subr.bf16.mxu0 %v1410_v53 }
 0x2e4   : > { %1043 = vmatpush3.bf16.xpose.msra.mxu0 %v1226_v58 }
 0x2e5   : > { %1044 = vmatprep.subr.bf16.mxu0 %v1410_v53 }
 0x2ec   : > { %1045 = vmatpush3.bf16.xpose.msra.mxu0 %v1227_v59 }
 0x2ed   : > { %1046 = vmatprep.subr.bf16.mxu0 %v1410_v53 }
 0x2f4   : > { %1047 = vmatpush3.bf16.xpose.msra.mxu0 %v1228_v60 }
 0x2fb   : > { %1049 = vmatmul.mubr.bf16.vlgmr.msra.gmra.mrb[0].mxu0 %v557_v61 }
 0x3cd   : > { %678 = sbr.rel (!%p1534_p12) target bundleno = 1029 (0x405), region = 60 }
 0x3ce   : > { %v663_v63 = vpop.f32.mrb[0].mxu0 }
 0x3cf   : > { %v664_v0 = vadd.f32 %v967_v62, %v663_v63  ;;  %v1050_v1 = vpop.f32.mrb[1].mxu0 }
 0x3d0   : > { %v666_v2 = vpop.f32.mrb[2].mxu0 }
 0x3d1   : > { %670 = vst [vmem:[%s1611_s19] sm:$0xff] %v664_v0  ;;  %v667_v3 = vadd.f32 %v967_v62, %v666_v2  ;;  %v1051_v4 = vpop.f32.mrb[3].mxu0 }
 0x3d3   : > { %671 = vst [vmem:[%s1611_s19 + $0x8] sm:$0xff] %v667_v3 }
 0x3d4   : > { %s1769_s12 = smov (!%p681_p13, %s680_s12), 2 }
 0x3d5   : > { %s978_s24 = sshll.u32 %s1769_s12, 7 }
 0x3d6   : > { %p982_p0 = scmp.eq.s32.totalorder %s978_s24, 0 }
 0x3d7   : > { %s1677_s23 = sshrl.u32 (!%p982_p0), %s1769_s12, 1 }
 0x3d8   : > { %691 = sbr.rel (%p982_p0) target bundleno = 1029 (0x405), region = 64  ;;  %p983_p12 = scmp.le.s32.totalorder (!%p982_p0), %s1677_s23, 0 }
 0x3df   : > { %868 = sbr.rel (%p983_p12) target bundleno = 1008 (0x3f0), region = 152  ;;  %s1373_s29 = smov (!%p983_p12), %s1674_s8  }
 0x3e0   : > { %s1377_s30 = smov (!%p983_p12), %s1611_s19   ;;  %s1381_s20 = smov (!%p983_p12), 0  }
 0x3e1   : > { %s1385_s9 = smov (!%p983_p12), 0  }
 0x3e6 LB: >> { %v755_v5 = vld [vmem:[%s1379_s30] sm:$0xff]  ;;  %v757_v6 = vld [vmem:[%s1379_s30 + $0x8] sm:$0xff]  ;;  %s759_s11 = sadd.s32 1, %s1383_s20  ;;  %s749_s9 = sadd.s32 1, %s1387_s9   ;;  %s1387_s9 = sphi %s1385_s9, %s749_s9   ;;  %s1383_s20 = sphi %s1381_s20, %s1382_s20   ;;  %s1379_s30 = sphi %s1377_s30, %s764_s30   ;;  %s1375_s29 = sphi %s1373_s29, %s765_s29  }
 0x3e7   : >> { %756 = vst [vmem:[%s1375_s29] sm:$0xff] %v755_v5  ;;  %758 = vst [vmem:[%s1375_s29 + $0x18] sm:$0xff] %v757_v6  ;;  %p760_p2 = scmp.ge.s32.totalorder %s759_s11, %s1677_s23  ;;  %p748_p3 = scmp.ge.s32.totalorder %s749_s9, %s1677_s23 }
 0x3e9   : >> { %s1771_s11 = smov (%p760_p2, %s759_s11), 0  ;;  %751 = sbr.rel (!%p748_p3) target bundleno = 998 (0x3e6), region = 158 }
 0x3ea   : >> { %s984_s26 = sshll.u32 %s1771_s11, 4  ;;  %s763_s16 = smul.u32 48, %s1771_s11 }
 0x3eb   : >> { %s764_s30 = scalar_lea.vmem %s1611_s19, %s984_s26 [#allocation5]   ;;  %s1382_s20 = smov %s1771_s11  }
 0x3ec   : >> { %s765_s29 = scalar_lea.vmem %s1674_s8, %s763_s16  }
 0x3f0 PF: > { %s1687_s14 = sand.u32 1, %s1769_s12   ;;  %s993_s17 = sshll.u32 %s1677_s23, 4 }
 0x3f1   : > { %s1691_s21 = scalar_lea.vmem %s1611_s19, %s993_s17 [#allocation5]   ;;  %s987_s13 = smul.u32 48, %s1677_s23 }
 0x3f2   : > { %p988_p5 = scmp.le.s32.totalorder %s1687_s14, 0 }
 0x3f3   : > { %s772_s24 = scalar_lea.vmem %s1674_s8, %s987_s13   ;;  %s1393_s18 = smov (!%p988_p5), %s1691_s21  }
 0x3f4   : > { %882 = sbr.rel (%p988_p5) target bundleno = 1029 (0x405), region = 163  ;;  %s1389_s15 = smov (!%p988_p5), %s772_s24  }
 0x3f5   : > { %s1397_s29 = smov (!%p988_p5), 0   ;;  %s1401_s30 = smov (!%p988_p5), 0  }
 0x3fb LB: >> { %v782_v7 = vld [vmem:[%s1395_s18] sm:$0xff]  ;;  %s784_s19 = sadd.s32 1, %s1399_s29  ;;  %s776_s30 = sadd.s32 1, %s1403_s30   ;;  %s1403_s30 = sphi %s1401_s30, %s776_s30   ;;  %s1399_s29 = sphi %s1397_s29, %s1398_s29   ;;  %s1395_s18 = sphi %s1393_s18, %s789_s18   ;;  %s1391_s15 = sphi %s1389_s15, %s790_s15  }
 0x3fc   : >> { %783 = vst [vmem:[%s1391_s15] sm:$0xff] %v782_v7  ;;  %p785_p6 = scmp.ge.s32.totalorder %s784_s19, %s1687_s14  ;;  %p775_p7 = scmp.ge.s32.totalorder %s776_s30, %s1687_s14 }
 0x3fe   : >> { %s1773_s19 = smov (%p785_p6, %s784_s19), 0  ;;  %778 = sbr.rel (!%p775_p7) target bundleno = 1019 (0x3fb), region = 169 }
 0x3ff   : >> { %s989_s12 = sshll.u32 %s1773_s19, 3  ;;  %s788_s8 = smul.u32 24, %s1773_s19 }
 0x400   : >> { %s789_s18 = scalar_lea.vmem %s1691_s21, %s989_s12 [#allocation5]   ;;  %s1398_s29 = smov %s1773_s19  }
 0x401   : >> { %s790_s15 = scalar_lea.vmem %s772_s24, %s788_s8  }
 0x405 PF: > { %s20_s10 = sadd.s32 1, %s1371_s10   ;;  %s1750_s23 = sld [smem:[#allocation11_spill]] }
 0x406   : > { %p17_p4 = scmp.ge.s32.totalorder %s20_s10, 8   ;;  %s1751_s29 = sld [smem:[#allocation7_spill]] }
 0x407   : > { %s1752_s30 = sld [smem:[#allocation8_spill]]  ;;  %s1753_s8 = sld [smem:[#allocation9_spill]] }
 0x408   : > { %s1754_s9 = sld [smem:[#allocation10_spill]]  ;;  %s1755_s24 = smov %s1339_s25 }
 0x409   : > { %s1756_s25 = smov %s1532_s22  ;;  %s1757_s26 = smov %s1347_s27 }
 0x40a   : > { %s1758_s27 = smov %s1351_s28  ;;  %19 = sbr.rel (!%p17_p4) target bundleno = 6 (0x6), region = 180 }
 0x40b   : > { %s1759_s28 = smov %s1750_s23 }
 0x411   :  { %806 = vsyncpa [#allocation4], 1 }
 0x412   :  { %808 = vsyncpa [#allocation4 + $0x1], 1 }

</bundles_post_ra>
